<compile_context>
chip_gen: v7x
topology: tpu7x:2x2x1
jax: 0.10.0
libtpu: 0.0.40
codegen_flags: <defaults>
</compile_context>

<pallas_src>
import jax
import jax.numpy as jnp
from jax.experimental import pallas as pl
from jax.experimental.pallas import tpu as pltpu


def _temporal_encoder_kernel(spikes_ref, w_ref, out_ref):
    # spikes_ref: (1, ti) VMEM, w_ref/out_ref: (to, ti) VMEM.
    out_ref[...] = w_ref[...] * spikes_ref[...]


def _pick_tiles(out_features, in_features, max_tile_bytes):
    """Choose (to, ti) block dims: lane-dense, full-row preferred, ~max_tile_bytes/tile."""
    max_elems = max(max_tile_bytes // 4, 8 * 128)
    # Lane (last) dim: prefer the whole row -> one long contiguous DMA burst per tile.
    if in_features * 8 <= max_elems:
        ti = in_features                      # full dim (always a legal block shape)
    else:
        ti = max(128, (max_elems // (8 * 128)) * 128)   # multiple of 128, cdiv grid masks edge
    # Sublane dim: as many rows as fit the budget; multiple of 8 unless full.
    rows = max(1, max_elems // max(ti, 1))
    if rows >= out_features:
        to = out_features                     # full dim
    else:
        to = max(8, (rows // 8) * 8)          # multiple of 8, cdiv grid masks edge
    return to, ti


def temporal_encoder_forward(x, weight, t, tau=1.0, max_tile_bytes=8 * 1024 * 1024):
    """x: (1, in_features) f32, weight: (out_features, in_features) f32, t: int.

    Returns (out, spikes): out (out_features, in_features) f32, spikes (in_features,) f32.
    """
    out_features, in_features = weight.shape
    x = jnp.asarray(x, jnp.float32).reshape(1, in_features)
    weight = jnp.asarray(weight, jnp.float32)

    # Spike encode in the wrapper, mirroring PyTorch's op order exactly:
    #   x = x / max(x) * 255 ; x = floor(x / tau) ; spike = (int32(x) == int32(t)).
    # (max(x) <= 0 / all-zero input yields inf/NaN, same as the PyTorch reference.)
    x_enc = jnp.floor((x / jnp.max(x)) * 255.0 / jnp.float32(tau)).astype(jnp.int32)
    spikes = (x_enc == jnp.int32(t)).astype(jnp.float32)          # (1, in_features)

    to, ti = _pick_tiles(out_features, in_features, max_tile_bytes)
    grid = (pl.cdiv(out_features, to), pl.cdiv(in_features, ti))

    out = pl.pallas_call(
        _temporal_encoder_kernel,
        out_shape=jax.ShapeDtypeStruct((out_features, in_features), jnp.float32),
        grid=grid,
        in_specs=[
            pl.BlockSpec((1, ti), lambda i, j: (0, j)),           # spikes (row-broadcast)
            pl.BlockSpec((to, ti), lambda i, j: (i, j)),          # weight
        ],
        out_specs=pl.BlockSpec((to, ti), lambda i, j: (i, j)),    # out
        compiler_params=pltpu.CompilerParams(
            dimension_semantics=("parallel", "arbitrary"),
            vmem_limit_bytes=48 * 1024 * 1024,                    # 4x 8 MiB tiles + small inputs
        ),
    )(spikes, weight)

    # TODO(synk): SpikeHistory bookkeeping ('cur'/'post' updates, history_update) is
    # host-side Python state in the original module; callers keep `spikes` instead.
    return out, spikes[0]


def reference_forward(x, weight, t, tau=1.0):
    """Pure-JAX reference mirroring the PyTorch forward loop."""
    xn = jnp.floor((x / jnp.max(x)) * 255.0 / jnp.float32(tau)).astype(jnp.int32)
    spikes = (xn[0] == jnp.int32(t)).astype(jnp.float32)
    return weight * spikes, spikes


if __name__ == "__main__":
    tau = 1.0
    key = jax.random.PRNGKey(0)
    k_w, k_x, k_w2, k_x2 = jax.random.split(key, 4)

    # --- small shape consistent with the module: weight (out, in), x (1, in) ---
    in_features, out_features = 16, 32
    weight = jax.random.uniform(k_w, (out_features, in_features), dtype=jnp.float32)
    x = jax.random.uniform(k_x, (1, in_features), dtype=jnp.float32)

    # Pick a timestep equal to one of the encoded intensities so at least one spike fires.
    x_enc = jnp.floor((x / jnp.max(x)) * 255.0 / tau).astype(jnp.int32)
    t = int(x_enc[0, 3])

    out, spikes = temporal_encoder_forward(x, weight, t, tau=tau)
    out = jax.block_until_ready(out)
    spikes = jax.block_until_ready(spikes)
    ref_out, ref_spikes = reference_forward(x, weight, t, tau=tau)
    assert out.shape == (out_features, in_features)
    assert spikes.shape == (in_features,)
    assert jnp.allclose(out, ref_out), "output mismatch vs reference (small)"
    assert jnp.allclose(spikes, ref_spikes), "spikes mismatch vs reference (small)"

    # --- second check with a tiny tile budget to exercise the multi-tile cdiv grid ---
    in2, out2 = 256, 64
    weight2 = jax.random.uniform(k_w2, (out2, in2), dtype=jnp.float32)
    x2 = jax.random.uniform(k_x2, (1, in2), dtype=jnp.float32)
    x2_enc = jnp.floor((x2 / jnp.max(x2)) * 255.0 / tau).astype(jnp.int32)
    t2 = int(x2_enc[0, 7])

    out_b, spikes_b = temporal_encoder_forward(x2, weight2, t2, tau=tau,
                                               max_tile_bytes=4096)   # forces (8, 128) tiles
    out_b = jax.block_until_ready(out_b)
    ref_out2, ref_spikes2 = reference_forward(x2, weight2, t2, tau=tau)
    assert jnp.allclose(out_b, ref_out2), "output mismatch vs reference (tiled)"
    assert jnp.allclose(spikes_b, ref_spikes2), "spikes mismatch vs reference (tiled)"

    print("KERNEL_OK")
</pallas_src>

<mosaic_0001>
module attributes {stable_mosaic.version = 11 : i64} {
  func.func @_temporal_encoder_kernel(%arg0: i32, %arg1: i32, %arg2: memref<1x16xf32, #tpu.memory_space<vmem>>, %arg3: memref<32x16xf32, #tpu.memory_space<vmem>>, %arg4: memref<32x16xf32, #tpu.memory_space<vmem>>) attributes {dimension_semantics = [#tpu.dimension_semantics<parallel>, #tpu.dimension_semantics<arbitrary>], iteration_bounds = array<i64: 1, 1>, scalar_prefetch = 0 : i64, scratch_operands = 0 : i64, tpu.core_type = #tpu.core_type<tc>, window_params = [{transform_indices = @transform_0, window_bounds = array<i64: 1, 16>}, {transform_indices = @transform_1, window_bounds = array<i64: 32, 16>}, {transform_indices = @transform_2, window_bounds = array<i64: 32, 16>}]} {
    %c0 = arith.constant 0 : index
    %c0_0 = arith.constant 0 : index
    %0 = vector.load %arg3[%c0, %c0_0] : memref<32x16xf32, #tpu.memory_space<vmem>>, vector<32x16xf32>
    %c0_1 = arith.constant 0 : index
    %c0_2 = arith.constant 0 : index
    %1 = vector.load %arg2[%c0_1, %c0_2] : memref<1x16xf32, #tpu.memory_space<vmem>>, vector<1x16xf32>
    %2 = vector.broadcast %1 : vector<1x16xf32> to vector<32x16xf32>
    %3 = arith.mulf %0, %2 : vector<32x16xf32>
    %c0_3 = arith.constant 0 : index
    %c0_4 = arith.constant 0 : index
    %4 = vector.load %arg4[%c0_3, %c0_4] : memref<32x16xf32, #tpu.memory_space<vmem>>, vector<32x16xf32>
    tpu.vector_store %arg4[%c0_3, %c0_4], %3 {strides = array<i32>} : memref<32x16xf32, #tpu.memory_space<vmem>>, vector<32x16xf32>,
    return
  }
  func.func @transform_0(%arg0: i32, %arg1: i32) -> (i32, i32) {
    %c0_i32 = arith.constant 0 : i32
    %c0_i32_0 = arith.constant 0 : i32
    return %c0_i32, %arg1 : i32, i32
  }
  func.func @transform_1(%arg0: i32, %arg1: i32) -> (i32, i32) {
    %c0_i32 = arith.constant 0 : i32
    return %arg0, %arg1 : i32, i32
  }
  func.func @transform_2(%arg0: i32, %arg1: i32) -> (i32, i32) {
    %c0_i32 = arith.constant 0 : i32
    return %arg0, %arg1 : i32, i32
  }
}

</mosaic_0001>

<bundles_post_ra>
// kernel: tpu_custom_call.1
= control target key start
LH: loop header
LB: loop body
LE: loop exit
PB: predicated region body
PF: predicated region fallthrough
CT: control target
= control target key end

     0   :  { %vm26_vm0 = vcmask 130048   ;;  %s78_s0 = inlined_call_operand.vmem [shape: f32[1,16], index: 0, kind: input, shape index: {}]   ;;  %s79_s1 = inlined_call_operand.vmem [shape: f32[32,16], index: 1, kind: input, shape index: {}]   ;;  %s80_s2 = inlined_call_operand.vmem [shape: f32[32,16], index: 2, kind: output, shape index: {}]  }
   0x1   :  { %v11_v0 = vld [vmem:[%s79_s1] sm:$0xff]  ;;  %v12_v2 = vld [vmem:[%s79_s1 + $0x8] sm:$0xff]  ;;  %v13_v5 = vld [vmem:[%s79_s1 + $0x10] sm:$0xff] }
   0x2   :  { %v35_v1 = vld [vmem:[%s78_s0] ss:$0 sm:$0xff]  ;;  %v14_v6 = vld [vmem:[%s79_s1 + $0x18] sm:$0xff] }
   0x3   :  { %v22_v3 = vmul.f32 %v35_v1, %v11_v0  ;;  %v23_v4 = vmul.f32 %v35_v1, %v12_v2  ;;  %v24_v7 = vmul.f32 %v35_v1, %v13_v5  ;;  %v25_v8 = vmul.f32 %v35_v1, %v14_v6 }
   0x5   :  { %27 = vst.msk [vmem:[%s80_s2] sm:$0xff] %vm26_vm0, %v22_v3  ;;  %28 = vst.msk [vmem:[%s80_s2 + $0x8] sm:$0xff] %vm26_vm0, %v23_v4 }
   0x6   :  { %29 = vst.msk [vmem:[%s80_s2 + $0x10] sm:$0xff] %vm26_vm0, %v24_v7  ;;  %30 = vst.msk [vmem:[%s80_s2 + $0x18] sm:$0xff] %vm26_vm0, %v25_v8 }

</bundles_post_ra>
